<compile_context>
chip_gen: v6e
topology: v6e:2x2x1
jax: 0.10.0
libtpu: 0.0.40
codegen_flags: <defaults>
</compile_context>

<pallas_src>
import functools

import jax
import jax.numpy as jnp
from jax.experimental import pallas as pl
from jax.experimental.pallas import tpu as pltpu


_VMEM_LIMIT_BYTES = 48 * 1024 * 1024  # explicit scoped-VMEM limit, safe on v5e/v6e/v7x


def _round_up(x, m):
    return (x + m - 1) // m * m


def _pick_tile(n, candidates):
    for t in candidates:
        if n % t == 0:
            return t
    return candidates[-1]


# ---------------------------------------------------------------------------
# Tiled matmul + bias:  out = a @ b + bias
# b and bias arrive pre-padded / pre-cast (cached on the model).
# ---------------------------------------------------------------------------
def _matmul_bias_single_k_kernel(a_ref, b_ref, bias_ref, o_ref):
    # Single K step: whole K resident per tile, no accumulator scratch needed.
    o_ref[...] = (jnp.dot(a_ref[...], b_ref[...],
                          preferred_element_type=jnp.float32)
                  + bias_ref[...]).astype(o_ref.dtype)


def _matmul_bias_kernel(a_ref, b_ref, bias_ref, o_ref, acc_ref):
    # Fallback path for large K (K-loop innermost, f32 accumulator).
    k = pl.program_id(2)

    @pl.when(k == 0)
    def _():
        acc_ref[...] = jnp.zeros_like(acc_ref)

    acc_ref[...] += jnp.dot(a_ref[...], b_ref[...],
                            preferred_element_type=jnp.float32)

    @pl.when(k == pl.num_programs(2) - 1)
    def _():
        o_ref[...] = (acc_ref[...] + bias_ref[...]).astype(o_ref.dtype)


def matmul_bias_pallas(a, b, bias, *, out_dtype=jnp.float32, tm_max=512):
    """out = a @ b + bias.

    a    : (M, K)   activations (already in the matmul dtype; K <= Kp)
    b    : (Kp, Np) weights, pre-padded to 128 multiples and pre-cast
    bias : (1, Np)  f32
    Returns (M, Np) in out_dtype.
    """
    M, K = a.shape
    Kp, Np = b.shape
    assert K <= Kp and Kp % 128 == 0 and Np % 128 == 0
    assert bias.shape == (1, Np)

    sub = 16 if jnp.dtype(a.dtype).itemsize == 2 else 8
    tm = min(tm_max, _round_up(M, sub))
    Mp = _round_up(M, tm)
    tn = _pick_tile(Np, (512, 256, 128))

    a_p = a
    if (Mp, Kp) != (M, K):
        a_p = jnp.pad(a, ((0, Mp - M), (0, Kp - K)))

    n_tiles, m_tiles = Np // tn, Mp // tm

    if Kp <= 2048:
        # Single K step; N outermost so each weight tile is fetched from HBM once
        # while activation row tiles stream through.
        out = pl.pallas_call(
            _matmul_bias_single_k_kernel,
            out_shape=jax.ShapeDtypeStruct((Mp, Np), out_dtype),
            grid=(n_tiles, m_tiles),
            in_specs=[
                pl.BlockSpec((tm, Kp), lambda j, i: (i, 0)),
                pl.BlockSpec((Kp, tn), lambda j, i: (0, j)),
                pl.BlockSpec((1, tn), lambda j, i: (0, j)),
            ],
            out_specs=pl.BlockSpec((tm, tn), lambda j, i: (i, j)),
            compiler_params=pltpu.CompilerParams(
                dimension_semantics=("parallel", "parallel"),
                vmem_limit_bytes=_VMEM_LIMIT_BYTES),
        )(a_p, b, bias)
    else:
        tk = _pick_tile(Kp, (2048, 1024, 512, 256, 128))
        out = pl.pallas_call(
            _matmul_bias_kernel,
            out_shape=jax.ShapeDtypeStruct((Mp, Np), out_dtype),
            grid=(n_tiles, m_tiles, Kp // tk),
            in_specs=[
                pl.BlockSpec((tm, tk), lambda j, i, k: (i, k)),
                pl.BlockSpec((tk, tn), lambda j, i, k: (k, j)),
                pl.BlockSpec((1, tn), lambda j, i, k: (0, j)),
            ],
            out_specs=pl.BlockSpec((tm, tn), lambda j, i, k: (i, j)),
            scratch_shapes=[pltpu.VMEM((tm, tn), jnp.float32)],
            compiler_params=pltpu.CompilerParams(
                dimension_semantics=("parallel", "parallel", "arbitrary"),
                vmem_limit_bytes=_VMEM_LIMIT_BYTES),
        )(a_p, b, bias)
    return out[:M, :]


# ---------------------------------------------------------------------------
# LSTM recurrence kernel, grid = (batch_tiles, time_chunks).
#   gx_ref : (t_chunk, b_tile, 4*Hp) f32 pre-activations (x @ W_ih + b, gate-padded)
#   whh_ref: (Hp, 4*Hp)              recurrent weights (resident, constant index)
#   h_ref  : (t_chunk, b_tile, Hp)   hidden-state chunk (out_dtype, e.g. bf16)
#   h_c,c_c: (b_tile, Hp) f32        VMEM carry across time chunks
# Padded gate columns / padded W_hh rows are zero, so padded hidden lanes stay 0
# and never contaminate real lanes.  Padded batch rows / trailing padded time
# steps compute bounded garbage that is sliced off after the vocab projection.
# ---------------------------------------------------------------------------
def _lstm_recurrence_kernel(gx_ref, whh_ref, h_ref, h_c, c_c, *,
                            t_chunk, hidden_pad):
    Hp = hidden_pad

    @pl.when(pl.program_id(1) == 0)  # new batch tile -> reset the carry
    def _():
        h_c[...] = jnp.zeros_like(h_c)
        c_c[...] = jnp.zeros_like(c_c)

    def step(t, _):
        h_prev = h_c[...]
        gates = gx_ref[t] + jnp.dot(h_prev.astype(whh_ref.dtype), whh_ref[...],
                                    preferred_element_type=jnp.float32)
        # PyTorch gate order [i, f, g, o]; each slab is a lane-aligned 128-multiple.
        i_g = jax.nn.sigmoid(gates[:, 0 * Hp:1 * Hp])
        f_g = jax.nn.sigmoid(gates[:, 1 * Hp:2 * Hp])
        g_g = jnp.tanh(gates[:, 2 * Hp:3 * Hp])
        o_g = jax.nn.sigmoid(gates[:, 3 * Hp:4 * Hp])
        c_new = f_g * c_c[...] + i_g * g_g
        h_new = o_g * jnp.tanh(c_new)
        h_c[...] = h_new
        c_c[...] = c_new
        h_ref[t] = h_new.astype(h_ref.dtype)
        return 0

    # Bounded unroll (<= 4) keeps LLO scheduling visibility without code blowup.
    jax.lax.fori_loop(0, t_chunk, step, 0, unroll=min(t_chunk, 4))


def lstm_recurrence_pallas(gates_x, w_hh_p, *, b_tile, t_chunk, out_dtype):
    """gates_x: (T_pad, B_pad, 4*Hp) f32 -> h sequence (T_pad, B_pad, Hp)."""
    T_pad, B_pad, G4 = gates_x.shape
    assert G4 % 4 == 0 and T_pad % t_chunk == 0 and B_pad % b_tile == 0
    Hp = G4 // 4
    kernel = functools.partial(_lstm_recurrence_kernel,
                               t_chunk=t_chunk, hidden_pad=Hp)
    return pl.pallas_call(
        kernel,
        out_shape=jax.ShapeDtypeStruct((T_pad, B_pad, Hp), out_dtype),
        grid=(B_pad // b_tile, T_pad // t_chunk),
        in_specs=[
            pl.BlockSpec((t_chunk, b_tile, 4 * Hp), lambda b, t: (t, b, 0)),
            pl.BlockSpec((Hp, 4 * Hp), lambda b, t: (0, 0)),
        ],
        out_specs=pl.BlockSpec((t_chunk, b_tile, Hp), lambda b, t: (t, b, 0)),
        scratch_shapes=[pltpu.VMEM((b_tile, Hp), jnp.float32),
                        pltpu.VMEM((b_tile, Hp), jnp.float32)],
        compiler_params=pltpu.CompilerParams(
            dimension_semantics=("parallel", "arbitrary"),
            vmem_limit_bytes=_VMEM_LIMIT_BYTES),
    )(gates_x, w_hh_p)


def _choose_t_chunk(b_tile, Hp, budget_bytes=4 * 1024 * 1024, max_chunk=4):
    """Time-chunk size such that one gates_x block stays under ~4 MiB."""
    per_step_bytes = b_tile * 4 * Hp * 4  # f32 gate slab bytes per time step
    return int(max(1, min(max_chunk, budget_bytes // per_step_bytes)))


# ---------------------------------------------------------------------------
# Weight padding helpers (lane-align each gate slab: H -> H_pad, 128-multiple).
# ---------------------------------------------------------------------------
def _pad_gate_columns(w, H, H_pad):
    """(..., 4*H) -> (..., 4*H_pad): gate k's columns at [k*H_pad, k*H_pad+H)."""
    lead = w.shape[:-1]
    w4 = w.reshape(lead + (4, H))
    w4 = jnp.pad(w4, [(0, 0)] * len(lead) + [(0, 0), (0, H_pad - H)])
    return w4.reshape(lead + (4 * H_pad,))


class DecoderRNNPallas:
    """JAX/Pallas re-implementation of the PyTorch DecoderRNN forward pass."""

    def __init__(self, embed_size, hidden_size, vocab_size, num_layers=1,
                 key=None, matmul_dtype=jnp.bfloat16):
        assert num_layers == 1, "single-layer LSTM"
        # nn.LSTM dropout=0.2 only applies between stacked layers; with
        # num_layers=1 it is a no-op, so it is intentionally omitted.
        if key is None:
            key = jax.random.PRNGKey(0)
        k = jax.random.split(key, 7)
        s = 0.1  # deterministic small-scale init (synthetic weights, not a checkpoint)
        E, H, V = embed_size, hidden_size, vocab_size
        self.embed = s * jax.random.normal(k[0], (V, E), jnp.float32)
        # stored pre-transposed for x @ W: W_ih (E,4H), W_hh (H,4H); gate order i,f,g,o
        self.w_ih = s * jax.random.normal(k[1], (E, 4 * H), jnp.float32)
        self.w_hh = s * jax.random.normal(k[2], (H, 4 * H), jnp.float32)
        b_ih = s * jax.random.normal(k[3], (4 * H,), jnp.float32)
        b_hh = s * jax.random.normal(k[4], (4 * H,), jnp.float32)
        self.bias = b_ih + b_hh                                   # (4H,)
        self.w_lin = s * jax.random.normal(k[5], (H, V), jnp.float32)
        self.b_lin = s * jax.random.normal(k[6], (V,), jnp.float32)

        self.embed_size, self.hidden_size, self.vocab_size = E, H, V
        self.matmul_dtype = matmul_dtype

        # --- cache padded (and pre-cast) weights ONCE; never re-pad per forward ---
        Ep, Hp, Vp = _round_up(E, 128), _round_up(H, 128), _round_up(V, 128)
        self.E_pad, self.H_pad, self.V_pad = Ep, Hp, Vp

        w_ih_pad = jnp.pad(_pad_gate_columns(self.w_ih, H, Hp),
                           ((0, Ep - E), (0, 0)))                  # (Ep, 4*Hp)
        w_hh_pad = jnp.pad(_pad_gate_columns(self.w_hh, H, Hp),
                           ((0, Hp - H), (0, 0)))                  # (Hp, 4*Hp)
        w_lin_pad = jnp.pad(self.w_lin, ((0, Hp - H), (0, Vp - V)))  # (Hp, Vp)
        self.bias_p = _pad_gate_columns(self.bias, H, Hp).reshape(1, 4 * Hp)
        self.b_lin_p = jnp.pad(self.b_lin, (0, Vp - V)).reshape(1, Vp)

        self._weights = {}
        for dt in (jnp.float32, jnp.bfloat16):
            name = jnp.dtype(dt).name
            self._weights[name] = (w_ih_pad.astype(dt),
                                   w_hh_pad.astype(dt),
                                   w_lin_pad.astype(dt))

    def forward(self, features, raw_captions):
        # features: (B, E) f32 ; raw_captions: (B, L) int32
        B, E = features.shape
        Hp, Ep, Vp, V = self.H_pad, self.E_pad, self.V_pad, self.vocab_size
        dt = jnp.dtype(self.matmul_dtype)
        w_ih_c, w_hh_c, w_lin_c = self._weights[dt.name]

        # -- XLA glue: embedding gather, feature prepend, time-major layout --------
        captions = raw_captions[:, :-1]                       # (B, L-1)
        embedding = jnp.take(self.embed, captions, axis=0)    # (B, L-1, E)
        x = jnp.concatenate([features[:, None, :], embedding], axis=1)  # (B, T, E)
        T = x.shape[1]
        x_tbe = jnp.transpose(x, (1, 0, 2))                   # (T, B, E)

        # Batch padding / tiling (sublane multiple of 8; 128/256-row tiles when
        # large so v7x can run the recurrence on both TensorCores).
        B_pad = _round_up(B, 8)
        if B_pad > 128:
            b_tile = 256 if B_pad >= 512 else 128
            B_pad = _round_up(B_pad, b_tile)
        else:
            b_tile = B_pad
        t_chunk = _choose_t_chunk(b_tile, Hp)
        T_pad = _round_up(T, t_chunk)

        x_p = jnp.pad(x_tbe, ((0, T_pad - T), (0, B_pad - B), (0, Ep - E)))
        x_p = x_p.astype(dt)

        # 1) input projection, hoisted out of the recurrence: one big MXU matmul
        gates_x = matmul_bias_pallas(
            x_p.reshape(T_pad * B_pad, Ep), w_ih_c, self.bias_p,
            out_dtype=jnp.float32)                            # (T_pad*B_pad, 4*Hp)
        gates_x = gates_x.reshape(T_pad, B_pad, 4 * Hp)

        # 2) sequential LSTM recurrence, chunked over time / tiled over batch;
        #    h emitted directly in the matmul dtype (no wrapper-side cast/copy).
        # TODO(synk): decode-style small-batch path ([x||h] @ [W_ih;W_hh] fused in
        # the recurrence, skipping gates_x) for the sample() use case.
        h_seq = lstm_recurrence_pallas(
            gates_x, w_hh_c, b_tile=b_tile, t_chunk=t_chunk, out_dtype=dt)

        # 3) vocab projection, hoisted: single-K-step matmul, W_lin streamed once
        logits = matmul_bias_pallas(
            h_seq.reshape(T_pad * B_pad, Hp), w_lin_c, self.b_lin_p,
            out_dtype=jnp.float32)                            # (T_pad*B_pad, Vp)
        logits = logits.reshape(T_pad, B_pad, Vp)[:T, :B, :V]
        return jnp.transpose(logits, (1, 0, 2))               # (B, T, V) batch_first


def _reference_forward(model, features, raw_captions):
    """Pure-JAX f32 reference with the PyTorch module's semantics."""
    captions = raw_captions[:, :-1]
    embedding = jnp.take(model.embed, captions, axis=0)
    x = jnp.concatenate([features[:, None, :], embedding], axis=1)  # (B, T, E)
    B = x.shape[0]
    H = model.hidden_size
    hp = jax.lax.Precision.HIGHEST

    def step(carry, x_t):
        h, c = carry
        gates = (jnp.dot(x_t, model.w_ih, precision=hp)
                 + jnp.dot(h, model.w_hh, precision=hp) + model.bias)
        i = jax.nn.sigmoid(gates[:, 0 * H:1 * H])
        f = jax.nn.sigmoid(gates[:, 1 * H:2 * H])
        g = jnp.tanh(gates[:, 2 * H:3 * H])
        o = jax.nn.sigmoid(gates[:, 3 * H:4 * H])
        c = f * c + i * g
        h = o * jnp.tanh(c)
        logits = jnp.dot(h, model.w_lin, precision=hp) + model.b_lin
        return (h, c), logits

    init = (jnp.zeros((B, H), jnp.float32), jnp.zeros((B, H), jnp.float32))
    _, logits = jax.lax.scan(step, init, jnp.transpose(x, (1, 0, 2)))
    return jnp.transpose(logits, (1, 0, 2))


if __name__ == "__main__":
    B, E, H, V, L = 2, 32, 32, 128, 8   # batch, embed, hidden, vocab, caption length
    key = jax.random.PRNGKey(0)
    kf, kc, km = jax.random.split(key, 3)

    features = jax.random.normal(kf, (B, E), jnp.float32)
    raw_captions = jax.random.randint(kc, (B, L), 0, V, jnp.int32)

    model = DecoderRNNPallas(embed_size=E, hidden_size=H, vocab_size=V, key=km)

    ref = jax.block_until_ready(_reference_forward(model, features, raw_captions))

    # 1) strict structural check: f32 matmul operands, f32 hidden writeback
    model.matmul_dtype = jnp.float32
    out_f32 = jax.block_until_ready(model.forward(features, raw_captions))
    assert out_f32.shape == (B, L, V)
    assert jnp.allclose(out_f32, ref, atol=5e-3, rtol=5e-3), \
        float(jnp.max(jnp.abs(out_f32 - ref)))

    # 2) performance path: bf16 matmul operands / bf16 hidden, f32 accumulation
    model.matmul_dtype = jnp.bfloat16
    out_bf16 = jax.block_until_ready(model.forward(features, raw_captions))
    assert out_bf16.shape == (B, L, V)
    assert jnp.allclose(out_bf16, ref, atol=2e-2, rtol=2e-2), \
        float(jnp.max(jnp.abs(out_bf16 - ref)))

    print("KERNEL_OK")
</pallas_src>

<mosaic_0001>
module attributes {stable_mosaic.version = 11 : i64} {
  func.func @_matmul_bias_single_k_kernel(%arg0: i32, %arg1: i32, %arg2: memref<64x128xf32, #tpu.memory_space<vmem>>, %arg3: memref<128x512xf32, #tpu.memory_space<vmem>>, %arg4: memref<1x512xf32, #tpu.memory_space<vmem>>, %arg5: memref<64x512xf32, #tpu.memory_space<vmem>>) attributes {dimension_semantics = [#tpu.dimension_semantics<parallel>, #tpu.dimension_semantics<parallel>], iteration_bounds = array<i64: 1, 1>, scalar_prefetch = 0 : i64, scratch_operands = 0 : i64, tpu.core_type = #tpu.core_type<tc>, window_params = [{transform_indices = @transform_0, window_bounds = array<i64: 64, 128>}, {transform_indices = @transform_1, window_bounds = array<i64: 128, 512>}, {transform_indices = @transform_2, window_bounds = array<i64: 1, 512>}, {transform_indices = @transform_3, window_bounds = array<i64: 64, 512>}]} {
    %c0 = arith.constant 0 : index
    %c0_0 = arith.constant 0 : index
    %0 = vector.load %arg2[%c0, %c0_0] : memref<64x128xf32, #tpu.memory_space<vmem>>, vector<64x128xf32>
    %c0_1 = arith.constant 0 : index
    %c0_2 = arith.constant 0 : index
    %1 = vector.load %arg3[%c0_1, %c0_2] : memref<128x512xf32, #tpu.memory_space<vmem>>, vector<128x512xf32>
    %cst = arith.constant dense<0.000000e+00> : vector<64x512xf32>
    %2 = tpu.matmul %0, %1, %cst {dimension_numbers = #tpu.dot_dimension_numbers<[1], [0], [0], [1], [0, 0, 1, 1], [], []>} : vector<64x128xf32>, vector<128x512xf32>, vector<64x512xf32> -> vector<64x512xf32>
    %c0_3 = arith.constant 0 : index
    %c0_4 = arith.constant 0 : index
    %3 = vector.load %arg4[%c0_3, %c0_4] : memref<1x512xf32, #tpu.memory_space<vmem>>, vector<1x512xf32>
    %4 = vector.broadcast %3 : vector<1x512xf32> to vector<64x512xf32>
    %5 = arith.addf %2, %4 : vector<64x512xf32>
    %c0_5 = arith.constant 0 : index
    %c0_6 = arith.constant 0 : index
    %6 = vector.load %arg5[%c0_5, %c0_6] : memref<64x512xf32, #tpu.memory_space<vmem>>, vector<64x512xf32>
    tpu.vector_store %arg5[%c0_5, %c0_6], %5 {strides = array<i32>} : memref<64x512xf32, #tpu.memory_space<vmem>>, vector<64x512xf32>,
    return
  }
  func.func @transform_0(%arg0: i32, %arg1: i32) -> (i32, i32) {
    %c0_i32 = arith.constant 0 : i32
    %c0_i32_0 = arith.constant 0 : i32
    return %arg1, %c0_i32 : i32, i32
  }
  func.func @transform_1(%arg0: i32, %arg1: i32) -> (i32, i32) {
    %c0_i32 = arith.constant 0 : i32
    %c0_i32_0 = arith.constant 0 : i32
    return %c0_i32, %arg0 : i32, i32
  }
  func.func @transform_2(%arg0: i32, %arg1: i32) -> (i32, i32) {
    %c0_i32 = arith.constant 0 : i32
    %c0_i32_0 = arith.constant 0 : i32
    return %c0_i32, %arg0 : i32, i32
  }
  func.func @transform_3(%arg0: i32, %arg1: i32) -> (i32, i32) {
    %c0_i32 = arith.constant 0 : i32
    return %arg1, %arg0 : i32, i32
  }
}

</mosaic_0001>

<bundles_post_ra>
// kernel: tpu_custom_call.1
= control target key start
LH: loop header
LB: loop body
LE: loop exit
PB: predicated region body
PF: predicated region fallthrough
CT: control target
= control target key end

     0   :  { %8 = vsyncpa [#allocation3], 0  ;;  %s622_s0 = inlined_call_operand.hbm [shape: f32[64,128], index: 0, kind: input, shape index: {}]   ;;  %s623_s1 = inlined_call_operand.hbm [shape: f32[128,512], index: 1, kind: input, shape index: {}]   ;;  %s624_s2 = inlined_call_operand.hbm [shape: f32[1,512], index: 2, kind: input, shape index: {}]   ;;  %s625_s3 = inlined_call_operand.hbm [shape: f32[64,512], index: 3, kind: output, shape index: {}]  }
   0x1   :  { %9 = vsyncpa [#allocation6], 0 }
   0x2   :  { %10 = vsyncpa [#allocation4], 0  ;;  %s519_s12 = smov [#allocation5]  }
   0x3   :  { %s28_s13 = sshll.u32 %s519_s12, 4  ;;  %s29_s13 = int_to_ptr.vmem [resolvable:$true] %s28_s13 }
   0x4   :  { %s441_s14 = scalar_lea.vmem %s29_s13, 8192  ;;  %p446_p1 = scmp.lt.s32.totalorder %s29_s13, %s29_s13 }
   0x5   :  { %p442_p0 = scmp.ne.s32.totalorder %s29_s13, %s441_s14  ;;  %p447_p2 = scmp.lt.s32.totalorder %s441_s14, %s441_s14 }
   0x7   :  { %p448_p3 = por %p447_p2, %p446_p1 }
   0x9   :  { %p449_p4 = pnand %p448_p3, %p442_p0 }
   0xb   :  { %452 = shalt.err (!%p449_p4)
}
   0xc   :  { %s520_s15 = smov 512   ;;  %s521_s16 = smov 32  }
   0xd   :  { %34 = dma.hbm_to_vmem [thread:$0]  %s623_s1, 8192, %s29_s13, [#allocation6], %s520_s15, %s520_s15, %s521_s16  }
   0xe   :  { %s522_s19 = smov [#allocation2]  }
   0xf   :  { %s16_s20 = sshll.u32 %s522_s19, 4  ;;  %s17_s20 = int_to_ptr.vmem [resolvable:$true] %s16_s20 }
  0x10   :  { %s461_s21 = scalar_lea.vmem %s17_s20, 1024  ;;  %p466_p6 = scmp.lt.s32.totalorder %s17_s20, %s17_s20 }
  0x11   :  { %p462_p5 = scmp.ne.s32.totalorder %s17_s20, %s461_s21  ;;  %p467_p7 = scmp.lt.s32.totalorder %s461_s21, %s461_s21 }
  0x13   :  { %p468_p8 = por %p467_p7, %p466_p6 }
  0x15   :  { %p469_p9 = pnand %p468_p8, %p462_p5 }
  0x17   :  { %472 = shalt.err (!%p469_p9)
}
  0x18   :  { %s523_s22 = smov 128   ;;  %s524_s23 = smov 8  }
  0x19   :  { %22 = dma.hbm_to_vmem [thread:$0]  %s622_s0, 1024, %s17_s20, [#allocation3], %s523_s22, %s523_s22, %s524_s23  }
  0x1a   :  { %s525_s26 = smov [#allocation7]  }
  0x1b   :  { %s41_s27 = sshll.u32 %s525_s26, 4  ;;  %s42_s27 = int_to_ptr.vmem [resolvable:$true] %s41_s27 }
  0x1c   :  { %s481_s1 = scalar_lea.vmem %s42_s27, 64  ;;  %p486_p11 = scmp.lt.s32.totalorder %s42_s27, %s42_s27 }
  0x1d   :  { %p482_p10 = scmp.ne.s32.totalorder %s42_s27, %s481_s1  ;;  %p487_p12 = scmp.lt.s32.totalorder %s481_s1, %s481_s1 }
  0x1f   :  { %p488_p13 = por %p487_p12, %p486_p11 }
  0x21   :  { %p489_p0 = pnand %p488_p13, %p482_p10 }
  0x23   :  { %492 = shalt.err (!%p489_p0)
}
  0x24   :  { %44 = dma.hbm_to_vmem [thread:$0]  %s624_s2, 64, %s42_s27, [#allocation6]  }
  0x25   :  { %513 = dma.done.wait [#allocation3], 1024  }
  0x26   :  { %514 = vsyncadd [#allocation3], 4294966272 }
  0x27   :  { %515 = dma.done.wait [#allocation6], 8256  }
  0x28   :  { %516 = vsyncadd [#allocation6], 4294959040  ;;  %v526_v0 = vmov 0.0   ;;  %v123_v1 = vld [vmem:[#allocation5 + $0x1e8] sm:$0xff]  ;;  %v125_v2 = vld [vmem:[#allocation5 + $0x1f8] sm:$0xff]  ;;  %s527_s0 = smov [#allocation8]  }
  0x29   :  { %212 = vmatprep.mubr.f32.mxu0 %v526_v0  ;;  %325 = vmatprep.mubr.f32.mxu1 %v526_v0  ;;  %v122_v3 = vld [vmem:[#allocation5 + $0x1e0] sm:$0xff]  ;;  %v124_v4 = vld [vmem:[#allocation5 + $0x1f0] sm:$0xff]  ;;  %v119_v5 = vld [vmem:[#allocation5 + $0x1c8] sm:$0xff]  ;;  %s411_s2 = sshll.u32 %s527_s0, 4  ;;  %s412_s2 = int_to_ptr.vmem [resolvable:$true] %s411_s2 }
  0x2a   :  { %148 = vmatprep.subr.mxu0 %v123_v1  ;;  %261 = vmatprep.subr.mxu1 %v125_v2  ;;  %v121_v6 = vld [vmem:[#allocation5 + $0x1d8] sm:$0xff]  ;;  %v118_v7 = vld [vmem:[#allocation5 + $0x1c0] sm:$0xff]  ;;  %v120_v8 = vld [vmem:[#allocation5 + $0x1d0] sm:$0xff]  ;;  %s493_s30 = scalar_lea.vmem %s412_s2, 4096  ;;  %p498_p2 = scmp.lt.s32.totalorder %s412_s2, %s412_s2 }
  0x2b   :  { %149 = vmatpush1.msra.mxu0 %v122_v3  ;;  %262 = vmatpush1.msra.mxu1 %v124_v4  ;;  %v115_v9 = vld [vmem:[#allocation5 + $0x1a8] sm:$0xff]  ;;  %v117_v10 = vld [vmem:[#allocation5 + $0x1b8] sm:$0xff]  ;;  %v114_v11 = vld [vmem:[#allocation5 + $0x1a0] sm:$0xff]  ;;  %p494_p1 = scmp.ne.s32.totalorder %s412_s2, %s493_s30  ;;  %p499_p3 = scmp.lt.s32.totalorder %s493_s30, %s493_s30 }
  0x2c   :  { %150 = vmatprep.subr.mxu0 %v119_v5  ;;  %263 = vmatprep.subr.mxu1 %v121_v6  ;;  %v116_v12 = vld [vmem:[#allocation5 + $0x1b0] sm:$0xff]  ;;  %v111_v13 = vld [vmem:[#allocation5 + $0x188] sm:$0xff]  ;;  %v113_v14 = vld [vmem:[#allocation5 + $0x198] sm:$0xff] }
  0x2d   :  { %151 = vmatpush1.msra.mxu0 %v118_v7  ;;  %264 = vmatpush1.msra.mxu1 %v120_v8  ;;  %v110_v15 = vld [vmem:[#allocation5 + $0x180] sm:$0xff]  ;;  %v112_v16 = vld [vmem:[#allocation5 + $0x190] sm:$0xff]  ;;  %v107_v17 = vld [vmem:[#allocation5 + $0x168] sm:$0xff]  ;;  %p500_p4 = por %p499_p3, %p498_p2 }
  0x2e   :  { %152 = vmatprep.subr.mxu0 %v115_v9  ;;  %265 = vmatprep.subr.mxu1 %v117_v10  ;;  %v109_v18 = vld [vmem:[#allocation5 + $0x178] sm:$0xff]  ;;  %v106_v19 = vld [vmem:[#allocation5 + $0x160] sm:$0xff]  ;;  %v108_v20 = vld [vmem:[#allocation5 + $0x170] sm:$0xff]  ;;  %v128_v10 = vlaneseq }
  0x2f   :  { %153 = vmatpush1.msra.mxu0 %v114_v11  ;;  %266 = vmatpush1.msra.mxu1 %v116_v12  ;;  %v103_v21 = vld [vmem:[#allocation5 + $0x148] sm:$0xff]  ;;  %v105_v22 = vld [vmem:[#allocation5 + $0x158] sm:$0xff]  ;;  %v102_v23 = vld [vmem:[#allocation5 + $0x140] sm:$0xff]  ;;  %p501_p5 = pnand %p500_p4, %p494_p1 }
  0x30   :  { %154 = vmatprep.subr.mxu0 %v111_v13  ;;  %267 = vmatprep.subr.mxu1 %v113_v14  ;;  %v104_v24 = vld [vmem:[#allocation5 + $0x150] sm:$0xff]  ;;  %v99_v25 = vld [vmem:[#allocation5 + $0x128] sm:$0xff]  ;;  %v101_v26 = vld [vmem:[#allocation5 + $0x138] sm:$0xff]  ;;  %v129_v11 = vshrl.u32 %v128_v10, 7 }
  0x31   :  { %155 = vmatpush1.msra.mxu0 %v110_v15  ;;  %268 = vmatpush1.msra.mxu1 %v112_v16  ;;  %v98_v27 = vld [vmem:[#allocation5 + $0x120] sm:$0xff]  ;;  %v100_v28 = vld [vmem:[#allocation5 + $0x130] sm:$0xff]  ;;  %v95_v29 = vld [vmem:[#allocation5 + $0x108] sm:$0xff] }
  0x32   :  { %156 = vmatprep.subr.mxu0 %v107_v17  ;;  %269 = vmatprep.subr.mxu1 %v109_v18  ;;  %v97_v30 = vld [vmem:[#allocation5 + $0x118] sm:$0xff]  ;;  %v94_v31 = vld [vmem:[#allocation5 + $0x100] sm:$0xff]  ;;  %v96_v32 = vld [vmem:[#allocation5 + $0x110] sm:$0xff]  ;;  %v130_v12 = vsub.s32 0, %v129_v11  ;;  %v138_v13 = vsub.s32 2, %v129_v11  ;;  %v134_v15 = vsub.s32 1, %v129_v11 }
  0x33   :  { %157 = vmatpush1.msra.mxu0 %v106_v19  ;;  %270 = vmatpush1.msra.mxu1 %v108_v20  ;;  %v91_v33 = vld [vmem:[#allocation5 + $0xe8] sm:$0xff]  ;;  %v93_v34 = vld [vmem:[#allocation5 + $0xf8] sm:$0xff]  ;;  %v90_v35 = vld [vmem:[#allocation5 + $0xe0] sm:$0xff]  ;;  %v142_v16 = vsub.s32 3, %v129_v11 }
  0x34   :  { %158 = vmatprep.subr.mxu0 %v103_v21  ;;  %271 = vmatprep.subr.mxu1 %v105_v22  ;;  %v92_v36 = vld [vmem:[#allocation5 + $0xf0] sm:$0xff]  ;;  %v87_v37 = vld [vmem:[#allocation5 + $0xc8] sm:$0xff]  ;;  %v89_v38 = vld [vmem:[#allocation5 + $0xd8] sm:$0xff] }
  0x35   :  { %159 = vmatpush1.msra.mxu0 %v102_v23  ;;  %272 = vmatpush1.msra.mxu1 %v104_v24  ;;  %v86_v39 = vld [vmem:[#allocation5 + $0xc0] sm:$0xff]  ;;  %v88_v40 = vld [vmem:[#allocation5 + $0xd0] sm:$0xff]  ;;  %v83_v41 = vld [vmem:[#allocation5 + $0xa8] sm:$0xff] }
  0x36   :  { %160 = vmatprep.subr.mxu0 %v99_v25  ;;  %273 = vmatprep.subr.mxu1 %v101_v26  ;;  %v85_v42 = vld [vmem:[#allocation5 + $0xb8] sm:$0xff]  ;;  %v82_v43 = vld [vmem:[#allocation5 + $0xa0] sm:$0xff]  ;;  %v84_v44 = vld [vmem:[#allocation5 + $0xb0] sm:$0xff] }
  0x37   :  { %161 = vmatpush1.msra.mxu0 %v98_v27  ;;  %274 = vmatpush1.msra.mxu1 %v100_v28  ;;  %v79_v45 = vld [vmem:[#allocation5 + $0x88] sm:$0xff]  ;;  %v81_v46 = vld [vmem:[#allocation5 + $0x98] sm:$0xff]  ;;  %v78_v47 = vld [vmem:[#allocation5 + $0x80] sm:$0xff] }
  0x38   :  { %162 = vmatprep.subr.mxu0 %v95_v29  ;;  %275 = vmatprep.subr.mxu1 %v97_v30  ;;  %v80_v48 = vld [vmem:[#allocation5 + $0x90] sm:$0xff]  ;;  %v75_v49 = vld [vmem:[#allocation5 + $0x68] sm:$0xff]  ;;  %v77_v50 = vld [vmem:[#allocation5 + $0x78] sm:$0xff] }
  0x39   :  { %163 = vmatpush1.msra.mxu0 %v94_v31  ;;  %276 = vmatpush1.msra.mxu1 %v96_v32  ;;  %v74_v51 = vld [vmem:[#allocation5 + $0x60] sm:$0xff]  ;;  %v76_v52 = vld [vmem:[#allocation5 + $0x70] sm:$0xff]  ;;  %v71_v53 = vld [vmem:[#allocation5 + $0x48] sm:$0xff] }
  0x3a   :  { %164 = vmatprep.subr.mxu0 %v91_v33  ;;  %277 = vmatprep.subr.mxu1 %v93_v34  ;;  %v73_v54 = vld [vmem:[#allocation5 + $0x58] sm:$0xff]  ;;  %v70_v55 = vld [vmem:[#allocation5 + $0x40] sm:$0xff]  ;;  %v72_v56 = vld [vmem:[#allocation5 + $0x50] sm:$0xff] }
  0x3b   :  { %165 = vmatpush1.msra.mxu0 %v90_v35  ;;  %278 = vmatpush1.msra.mxu1 %v92_v36  ;;  %v67_v57 = vld [vmem:[#allocation5 + $0x28] sm:$0xff]  ;;  %v69_v58 = vld [vmem:[#allocation5 + $0x38] sm:$0xff]  ;;  %v66_v59 = vld [vmem:[#allocation5 + $0x20] sm:$0xff] }
  0x3c   :  { %166 = vmatprep.subr.mxu0 %v87_v37  ;;  %279 = vmatprep.subr.mxu1 %v89_v38  ;;  %v68_v60 = vld [vmem:[#allocation5 + $0x30] sm:$0xff]  ;;  %v63_v61 = vld [vmem:[#allocation5 + $0x8] sm:$0xff]  ;;  %v65_v62 = vld [vmem:[#allocation5 + $0x18] sm:$0xff] }
  0x3d   :  { %167 = vmatpush1.msra.mxu0 %v86_v39  ;;  %280 = vmatpush1.msra.mxu1 %v88_v40  ;;  %v62_v63 = vld [vmem:[#allocation5] sm:$0xff]  ;;  %v64_v1 = vld [vmem:[#allocation5 + $0x10] sm:$0xff]  ;;  %v55_v3 = vld [vmem:[#allocation2 + $0x8] sm:$0xff] }
  0x3e   :  { %168 = vmatprep.subr.mxu0 %v83_v41  ;;  %281 = vmatprep.subr.mxu1 %v85_v42  ;;  %v54_v2 = vld [vmem:[#allocation2] sm:$0xff]  ;;  %v56_v4 = vld [vmem:[#allocation2 + $0x10] sm:$0xff]  ;;  %v57_v5 = vld [vmem:[#allocation2 + $0x18] sm:$0xff] }
  0x3f   :  { %169 = vmatpush1.msra.mxu0 %v82_v43  ;;  %282 = vmatpush1.msra.mxu1 %v84_v44  ;;  %v58_v6 = vld [vmem:[#allocation2 + $0x20] sm:$0xff]  ;;  %v59_v7 = vld [vmem:[#allocation2 + $0x28] sm:$0xff]  ;;  %v60_v8 = vld [vmem:[#allocation2 + $0x30] sm:$0xff] }
  0x40   :  { %170 = vmatprep.subr.mxu0 %v79_v45  ;;  %283 = vmatprep.subr.mxu1 %v81_v46  ;;  %v61_v9 = vld [vmem:[#allocation2 + $0x38] sm:$0xff]  ;;  %v126_v14 = vld [vmem:[#allocation7] sm:$0xf] }
  0x41   :  { %171 = vmatpush1.msra.mxu0 %v78_v47  ;;  %284 = vmatpush1.msra.mxu1 %v80_v48  ;;  %v576_v17 = vrot.slane %v126_v14, %v130_v12  ;;  %v578_v18 = vrot.slane %v126_v14, %v138_v13  ;;  %v580_v19 = vrot.slane %v126_v14, %v134_v15 }
  0x42   :  { %172 = vmatprep.subr.mxu0 %v75_v49  ;;  %285 = vmatprep.subr.mxu1 %v77_v50  ;;  %v582_v20 = vrot.slane %v126_v14, %v142_v16 }
  0x43   :  { %173 = vmatpush1.msra.mxu0 %v74_v51  ;;  %286 = vmatpush1.msra.mxu1 %v76_v52 }
  0x44   :  { %174 = vmatprep.subr.mxu0 %v71_v53  ;;  %287 = vmatprep.subr.mxu1 %v73_v54 }
  0x45   :  { %175 = vmatpush1.msra.mxu0 %v70_v55  ;;  %288 = vmatpush1.msra.mxu1 %v72_v56 }
  0x46   :  { %176 = vmatprep.subr.mxu0 %v67_v57  ;;  %289 = vmatprep.subr.mxu1 %v69_v58 }
  0x47   :  { %177 = vmatpush1.msra.mxu0 %v66_v59  ;;  %290 = vmatpush1.msra.mxu1 %v68_v60 }
  0x48   :  { %178 = vmatprep.subr.mxu0 %v63_v61  ;;  %291 = vmatprep.subr.mxu1 %v65_v62 }
  0x49   :  { %179 = vmatpush1.msra.mxu0 %v62_v63  ;;  %292 = vmatpush1.msra.mxu1 %v64_v1 }
  0x4a   :  { %213 = vmatmul.mubr.f32.vlgmr.msra.gmra.mxu0 %v54_v2  ;;  %326 = vmatmul.mubr.f32.vlgmr.msra.gmra.mxu1 %v54_v2 }
  0x4b   :  { %218 = vmatprep.mubr.f32.mxu0 %v526_v0  ;;  %331 = vmatprep.mubr.f32.mxu1 %v526_v0 }
  0x4e   :  { %219 = vmatmul.mubr.f32.gmra.mxu0 %v55_v3  ;;  %332 = vmatmul.mubr.f32.gmra.mxu1 %v55_v3 }
  0x4f   :  { %224 = vmatprep.mubr.f32.mxu0 %v526_v0  ;;  %337 = vmatprep.mubr.f32.mxu1 %v526_v0 }
  0x52   :  { %225 = vmatmul.mubr.f32.gmra.mxu0 %v56_v4  ;;  %338 = vmatmul.mubr.f32.gmra.mxu1 %v56_v4 }
  0x53   :  { %230 = vmatprep.mubr.f32.mxu0 %v526_v0  ;;  %343 = vmatprep.mubr.f32.mxu1 %v526_v0 }
  0x56   :  { %231 = vmatmul.mubr.f32.gmra.mxu0 %v57_v5  ;;  %344 = vmatmul.mubr.f32.gmra.mxu1 %v57_v5 }
  0x57   :  { %236 = vmatprep.mubr.f32.mxu0 %v526_v0  ;;  %349 = vmatprep.mubr.f32.mxu1 %v526_v0 }
  0x5a   :  { %237 = vmatmul.mubr.f32.gmra.mxu0 %v58_v6  ;;  %350 = vmatmul.mubr.f32.gmra.mxu1 %v58_v6 }
  0x5b   :  { %242 = vmatprep.mubr.f32.mxu0 %v526_v0  ;;  %355 = vmatprep.mubr.f32.mxu1 %v526_v0 }
  0x5e   :  { %243 = vmatmul.mubr.f32.gmra.mxu0 %v59_v7  ;;  %356 = vmatmul.mubr.f32.gmra.mxu1 %v59_v7 }
  0x5f   :  { %248 = vmatprep.mubr.f32.mxu0 %v526_v0  ;;  %361 = vmatprep.mubr.f32.mxu1 %v526_v0 }
  0x62   :  { %249 = vmatmul.mubr.f32.gmra.mxu0 %v60_v8  ;;  %362 = vmatmul.mubr.f32.gmra.mxu1 %v60_v8 }
  0x63   :  { %254 = vmatprep.mubr.f32.mxu0 %v526_v0  ;;  %367 = vmatprep.mubr.f32.mxu1 %v526_v0 }
  0x66   :  { %255 = vmatmul.mubr.f32.gmra.mxu0 %v61_v9  ;;  %368 = vmatmul.mubr.f32.gmra.mxu1 %v61_v9 }
 0x10a   :  { %v214_v21 = vpop.f32.mrf.mxu0  ;;  %v327_v0 = vpop.f32.mrf.mxu1 }
 0x10b   :  { %v215_v22 = vadd.f32 %v214_v21, %v576_v17  ;;  %v328_v23 = vadd.f32 %v327_v0, %v578_v18 }
 0x10c   :  { %v216_v24 = vpop.f32.mrf.mxu0  ;;  %v329_v25 = vpop.f32.mrf.mxu1 }
 0x10d   :  { %374 = vst [vmem:[#allocation8] sm:$0xff] %v215_v22  ;;  %376 = vst [vmem:[#allocation8 + $0x10] sm:$0xff] %v328_v23  ;;  %v217_v26 = vadd.f32 %v216_v24, %v580_v19  ;;  %v330_v27 = vadd.f32 %v329_v25, %v582_v20 }
 0x10e   :  { %v220_v28 = vpop.f32.mrf.mxu0  ;;  %v333_v29 = vpop.f32.mrf.mxu1 }
 0x10f   :  { %375 = vst [vmem:[#allocation8 + $0x8] sm:$0xff] %v217_v26  ;;  %377 = vst [vmem:[#allocation8 + $0x18] sm:$0xff] %v330_v27  ;;  %v221_v30 = vadd.f32 %v220_v28, %v576_v17  ;;  %v334_v31 = vadd.f32 %v333_v29, %v578_v18 }
 0x110   :  { %v222_v32 = vpop.f32.mrf.mxu0  ;;  %v335_v33 = vpop.f32.mrf.mxu1 }
 0x111   :  { %378 = vst [vmem:[#allocation8 + $0x20] sm:$0xff] %v221_v30  ;;  %380 = vst [vmem:[#allocation8 + $0x30] sm:$0xff] %v334_v31  ;;  %v223_v34 = vadd.f32 %v222_v32, %v580_v19  ;;  %v336_v35 = vadd.f32 %v335_v33, %v582_v20 }
 0x112   :  { %v226_v36 = vpop.f32.mrf.mxu0  ;;  %v339_v37 = vpop.f32.mrf.mxu1 }
 0x113   :  { %379 = vst [vmem:[#allocation8 + $0x28] sm:$0xff] %v223_v34  ;;  %381 = vst [vmem:[#allocation8 + $0x38] sm:$0xff] %v336_v35  ;;  %v227_v38 = vadd.f32 %v226_v36, %v576_v17  ;;  %v340_v39 = vadd.f32 %v339_v37, %v578_v18 }
 0x114   :  { %v228_v40 = vpop.f32.mrf.mxu0  ;;  %v341_v41 = vpop.f32.mrf.mxu1 }
 0x115   :  { %382 = vst [vmem:[#allocation8 + $0x40] sm:$0xff] %v227_v38  ;;  %384 = vst [vmem:[#allocation8 + $0x50] sm:$0xff] %v340_v39  ;;  %v229_v42 = vadd.f32 %v228_v40, %v580_v19  ;;  %v342_v43 = vadd.f32 %v341_v41, %v582_v20 }
 0x116   :  { %v232_v44 = vpop.f32.mrf.mxu0  ;;  %v345_v45 = vpop.f32.mrf.mxu1 }
 0x117   :  { %383 = vst [vmem:[#allocation8 + $0x48] sm:$0xff] %v229_v42  ;;  %385 = vst [vmem:[#allocation8 + $0x58] sm:$0xff] %v342_v43  ;;  %v233_v46 = vadd.f32 %v232_v44, %v576_v17  ;;  %v346_v47 = vadd.f32 %v345_v45, %v578_v18 }
 0x118   :  { %v234_v48 = vpop.f32.mrf.mxu0  ;;  %v347_v49 = vpop.f32.mrf.mxu1 }
 0x119   :  { %386 = vst [vmem:[#allocation8 + $0x60] sm:$0xff] %v233_v46  ;;  %388 = vst [vmem:[#allocation8 + $0x70] sm:$0xff] %v346_v47  ;;  %v235_v50 = vadd.f32 %v234_v48, %v580_v19  ;;  %v348_v51 = vadd.f32 %v347_v49, %v582_v20 }
 0x11a   :  { %v238_v52 = vpop.f32.mrf.mxu0  ;;  %v351_v53 = vpop.f32.mrf.mxu1 }
 0x11b   :  { %387 = vst [vmem:[#allocation8 + $0x68] sm:$0xff] %v235_v50  ;;  %389 = vst [vmem:[#allocation8 + $0x78] sm:$0xff] %v348_v51  ;;  %v239_v54 = vadd.f32 %v238_v52, %v576_v17  ;;  %v352_v55 = vadd.f32 %v351_v53, %v578_v18 }
 0x11c   :  { %v240_v56 = vpop.f32.mrf.mxu0  ;;  %v353_v57 = vpop.f32.mrf.mxu1 }
 0x11d   :  { %390 = vst [vmem:[#allocation8 + $0x80] sm:$0xff] %v239_v54  ;;  %392 = vst [vmem:[#allocation8 + $0x90] sm:$0xff] %v352_v55  ;;  %v241_v58 = vadd.f32 %v240_v56, %v580_v19  ;;  %v354_v59 = vadd.f32 %v353_v57, %v582_v20 }
 0x11e   :  { %v244_v60 = vpop.f32.mrf.mxu0  ;;  %v357_v61 = vpop.f32.mrf.mxu1 }
 0x11f   :  { %391 = vst [vmem:[#allocation8 + $0x88] sm:$0xff] %v241_v58  ;;  %393 = vst [vmem:[#allocation8 + $0x98] sm:$0xff] %v354_v59  ;;  %v245_v62 = vadd.f32 %v244_v60, %v576_v17  ;;  %v358_v63 = vadd.f32 %v357_v61, %v578_v18 }
 0x120   :  { %v246_v1 = vpop.f32.mrf.mxu0  ;;  %v359_v2 = vpop.f32.mrf.mxu1 }
 0x121   :  { %394 = vst [vmem:[#allocation8 + $0xa0] sm:$0xff] %v245_v62  ;;  %396 = vst [vmem:[#allocation8 + $0xb0] sm:$0xff] %v358_v63  ;;  %v247_v3 = vadd.f32 %v246_v1, %v580_v19  ;;  %v360_v4 = vadd.f32 %v359_v2, %v582_v20 }
 0x122   :  { %v250_v5 = vpop.f32.mrf.mxu0  ;;  %v363_v6 = vpop.f32.mrf.mxu1 }
 0x123   :  { %395 = vst [vmem:[#allocation8 + $0xa8] sm:$0xff] %v247_v3  ;;  %397 = vst [vmem:[#allocation8 + $0xb8] sm:$0xff] %v360_v4  ;;  %v251_v7 = vadd.f32 %v250_v5, %v576_v17  ;;  %v364_v8 = vadd.f32 %v363_v6, %v578_v18 }
 0x124   :  { %v252_v9 = vpop.f32.mrf.mxu0  ;;  %v365_v10 = vpop.f32.mrf.mxu1 }
 0x125   :  { %398 = vst [vmem:[#allocation8 + $0xc0] sm:$0xff] %v251_v7  ;;  %400 = vst [vmem:[#allocation8 + $0xd0] sm:$0xff] %v364_v8  ;;  %v253_v11 = vadd.f32 %v252_v9, %v580_v19  ;;  %v366_v12 = vadd.f32 %v365_v10, %v582_v20 }
 0x126   :  { %v256_v13 = vpop.f32.mrf.mxu0  ;;  %v369_v14 = vpop.f32.mrf.mxu1 }
 0x127   :  { %399 = vst [vmem:[#allocation8 + $0xc8] sm:$0xff] %v253_v11  ;;  %401 = vst [vmem:[#allocation8 + $0xd8] sm:$0xff] %v366_v12  ;;  %v257_v15 = vadd.f32 %v256_v13, %v576_v17  ;;  %v370_v16 = vadd.f32 %v369_v14, %v578_v18 }
 0x128   :  { %v258_v21 = vpop.f32.mrf.mxu0  ;;  %v371_v0 = vpop.f32.mrf.mxu1 }
 0x129   :  { %402 = vst [vmem:[#allocation8 + $0xe0] sm:$0xff] %v257_v15  ;;  %404 = vst [vmem:[#allocation8 + $0xf0] sm:$0xff] %v370_v16  ;;  %v259_v22 = vadd.f32 %v258_v21, %v580_v19  ;;  %v372_v23 = vadd.f32 %v371_v0, %v582_v20 }
 0x12b   :  { %403 = vst [vmem:[#allocation8 + $0xe8] sm:$0xff] %v259_v22  ;;  %405 = vst [vmem:[#allocation8 + $0xf8] sm:$0xff] %v372_v23 }
 0x12c   :  { %504 = shalt.err (!%p501_p5)
}
 0x12d   :  { %417 = dma.vmem_to_hbm [thread:$0]  %s412_s2, 4096, %s625_s3, [#allocation4], %s520_s15, %s520_s15, %s521_s16  }
 0x12e   :  { %517 = dma.done.wait [#allocation4], 4096  }
 0x12f   :  { %518 = vsyncadd [#allocation4], 4294963200 }
 0x130   :  { %421 = vsyncpa [#allocation3], 1 }
 0x131   :  { %422 = vsyncpa [#allocation6], 1 }
 0x132   :  { %423 = vsyncpa [#allocation4], 1 }

</bundles_post_ra>
